<compile_context>
chip_gen: v6e
topology: v6e:2x2x1
jax: 0.10.0
libtpu: 0.0.40
codegen_flags: <defaults>
</compile_context>

<pallas_src>
import functools
import math

import jax
import jax.numpy as jnp
import numpy as np
from jax.experimental import pallas as pl
from jax.experimental.pallas import tpu as pltpu

LN_EPS = 1e-5
MASK_FILL = -1e10


# ----------------------------------------------------------------------------
# small helpers
# ----------------------------------------------------------------------------
def _layernorm(x, gamma, beta):
    x = x.astype(jnp.float32)
    mean = jnp.mean(x, axis=-1, keepdims=True)
    var = jnp.mean(jnp.square(x - mean), axis=-1, keepdims=True)
    return (x - mean) * jax.lax.rsqrt(var + LN_EPS) * gamma + beta


def _split_heads(x2d, n_heads, head_dim, offset):
    """[L, ...] -> head-major [n_heads, L, head_dim] (cheap slice+stack; matmuls stay batched)."""
    return jnp.stack(
        [x2d[:, offset + h * head_dim: offset + (h + 1) * head_dim] for h in range(n_heads)],
        axis=0)


def _bcast_spec(shape):
    """Grid-invariant input (weights/biases): full block, constant block index -> fetched once."""
    zeros = (0,) * len(shape)
    return pl.BlockSpec(shape, lambda *_, z=zeros: z)


def _pick_block(n, max_block):
    if n <= max_block:
        return n
    for cand in (512, 256, 128, 64, 32, 16, 8):
        if cand <= max_block and n % cand == 0:
            return cand
    return n


def _compiler_params(dims):
    vmem_limit = None
    try:
        # Generation-aware scoped-VMEM budget (128 MiB on v5e/v6e, 64 MiB on v7x).
        cap = pltpu.get_tpu_info().vmem_capacity_bytes
        vmem_limit = int(cap) * 3 // 4
    except Exception:
        vmem_limit = None
    return pltpu.CompilerParams(dimension_semantics=dims, vmem_limit_bytes=vmem_limit)


# ----------------------------------------------------------------------------
# Pallas kernels
# ----------------------------------------------------------------------------
def _attention_tail(x_res_f32, q3, k3, v3, mask, wo3, bo, gamma, beta,
                    out_ref, attn_ref, *, head_dim, compute_dtype, approx):
    """Shared attention core: q3/k3/v3 are head-major [nh, L, hd] in compute_dtype."""
    # scores[h, q, k]   (MXU, f32 accumulation)
    energy = jnp.einsum("hqd,hkd->hqk", q3, k3, preferred_element_type=jnp.float32)
    energy = energy / jnp.float32(math.sqrt(head_dim))
    energy = jnp.where(mask[None, :, :] == 0.0, jnp.float32(MASK_FILL), energy)

    e_max = jnp.max(energy, axis=-1, keepdims=True)
    p = jnp.exp(energy - e_max)
    denom = jnp.sum(p, axis=-1, keepdims=True)
    if approx:
        attn = p * pl.reciprocal(denom, approx=True)   # EUP slot (fast path)
    else:
        attn = p / denom                               # exact (f32 verification path)

    if attn_ref is not None:
        attn_ref[0] = attn                             # [nh, Lq, Lk] f32

    ctx = jnp.einsum("hqk,hkd->hqd", attn.astype(compute_dtype), v3,
                     preferred_element_type=jnp.float32)            # [nh, Lq, hd]
    # output projection: per-head partials + head-sum (avoids re-concat/transpose)
    proj = jnp.sum(
        jnp.einsum("hqd,hdo->hqo", ctx.astype(compute_dtype), wo3,
                   preferred_element_type=jnp.float32),
        axis=0) + bo                                                 # [Lq, H]

    out_ref[0] = _layernorm(x_res_f32 + proj, gamma, beta)


def mha_self_fused_kernel(x_ref, mask_ref, wqkv_ref, bqkv_ref, wo3_ref, bo_ref,
                          g_ref, be_ref, out_ref, *attn_out,
                          n_heads, head_dim, compute_dtype, approx):
    """Self-attention, fused QKV ([H,3H]) + residual + LayerNorm, whole sequence per step."""
    cd = compute_dtype
    H = n_heads * head_dim
    x = x_ref[0]                                                     # [L, H] (compute dtype)
    qkv = jnp.dot(x, wqkv_ref[...], preferred_element_type=jnp.float32) + bqkv_ref[...]
    qkv_c = qkv.astype(cd)
    q3 = _split_heads(qkv_c, n_heads, head_dim, 0)
    k3 = _split_heads(qkv_c, n_heads, head_dim, H)
    v3 = _split_heads(qkv_c, n_heads, head_dim, 2 * H)
    _attention_tail(x.astype(jnp.float32), q3, k3, v3, mask_ref[0],
                    wo3_ref[...], bo_ref[...], g_ref[...], be_ref[...],
                    out_ref, attn_out[0] if attn_out else None,
                    head_dim=head_dim, compute_dtype=cd, approx=approx)


def mha_kernel(xq_ref, xkv_ref, mask_ref, wq_ref, bq_ref, wkv_ref, bkv_ref,
               wo3_ref, bo_ref, g_ref, be_ref, out_ref, *attn_out,
               n_heads, head_dim, compute_dtype, approx):
    """General MHA (cross-attention / tiled queries): Q separate, K/V fused ([H,2H])."""
    cd = compute_dtype
    H = n_heads * head_dim
    xq = xq_ref[0]                                                   # [q_block, H]
    xkv = xkv_ref[0]                                                 # [Lk, H]
    q = (jnp.dot(xq, wq_ref[...], preferred_element_type=jnp.float32) + bq_ref[...]).astype(cd)
    kv = (jnp.dot(xkv, wkv_ref[...], preferred_element_type=jnp.float32) + bkv_ref[...]).astype(cd)
    q3 = _split_heads(q, n_heads, head_dim, 0)
    k3 = _split_heads(kv, n_heads, head_dim, 0)
    v3 = _split_heads(kv, n_heads, head_dim, H)
    _attention_tail(xq.astype(jnp.float32), q3, k3, v3, mask_ref[0],
                    wo3_ref[...], bo_ref[...], g_ref[...], be_ref[...],
                    out_ref, attn_out[0] if attn_out else None,
                    head_dim=head_dim, compute_dtype=cd, approx=approx)


def ffn_kernel(x_ref, w1_ref, b1_ref, w2_ref, b2_ref, g_ref, be_ref, out_ref,
               *, compute_dtype):
    x = x_ref[0]                                                     # [rb, H] (compute dtype)
    h1 = jnp.dot(x, w1_ref[...], preferred_element_type=jnp.float32) + b1_ref[...]
    h1 = jnp.maximum(h1, 0.0)                                        # ReLU (dropout = identity)
    y = jnp.dot(h1.astype(compute_dtype), w2_ref[...],
                preferred_element_type=jnp.float32) + b2_ref[...]
    out_ref[0] = _layernorm(x.astype(jnp.float32) + y, g_ref[...], be_ref[...])
    # TODO(synk): for very large pf_dim on v7x (64 MiB VMEM), add K-tiling over pf_dim
    # with a VMEM accumulator instead of keeping both weight matrices resident.


def linear_kernel(x_ref, w_ref, b_ref, out_ref):
    out_ref[0] = jnp.dot(x_ref[0], w_ref[...], preferred_element_type=jnp.float32) + b_ref[...]


# ----------------------------------------------------------------------------
# Layer wrappers (pallas_call plumbing)
# ----------------------------------------------------------------------------
def mha_layer(x_q, x_kv, mask, p, n_heads, *, compute_dtype=jnp.float32,
              want_attn=True, max_q_block=256):
    """MultiHeadAttention + residual + LayerNorm.  Returns (out_f32, attn_or_None).

    mask: [B, Mq, Lk] with Mq in {Lq, 1}; broadcast happens inside the kernel.
    """
    B, Lq, H = x_q.shape
    Lk = x_kv.shape[1]
    hd = H // n_heads
    cd = compute_dtype
    approx = (cd == jnp.bfloat16)
    is_self = x_q is x_kv
    mq = mask.shape[1]

    wo3 = p["wo"].reshape(n_heads, hd, H).astype(cd)     # per-head output proj (wrapper reshape)
    bo, gam, bet = p["bo"], p["ln_g"], p["ln_b"]

    out_shapes = [jax.ShapeDtypeStruct((B, Lq, H), jnp.float32)]
    if want_attn:
        out_shapes.append(jax.ShapeDtypeStruct((B, n_heads, Lq, Lk), jnp.float32))

    if is_self and Lq <= max_q_block:
        # -------- fully fused QKV, one grid step per batch element --------
        wqkv = jnp.concatenate([p["wq"], p["wk"], p["wv"]], axis=1).astype(cd)
        bqkv = jnp.concatenate([p["bq"], p["bk"], p["bv"]], axis=1)
        kernel = functools.partial(mha_self_fused_kernel, n_heads=n_heads, head_dim=hd,
                                   compute_dtype=cd, approx=approx)
        grid = (B,)
        in_specs = [
            pl.BlockSpec((1, Lq, H), lambda b: (b, 0, 0)),
            pl.BlockSpec((1, mq, Lk), lambda b: (b, 0, 0)),
        ] + [_bcast_spec(a.shape) for a in (wqkv, bqkv, wo3, bo, gam, bet)]
        out_specs = [pl.BlockSpec((1, Lq, H), lambda b: (b, 0, 0))]
        if want_attn:
            out_specs.append(pl.BlockSpec((1, n_heads, Lq, Lk), lambda b: (b, 0, 0, 0)))
        operands = (x_q.astype(cd), mask, wqkv, bqkv, wo3, bo, gam, bet)
        dims = ("parallel",)
    else:
        # -------- general path: queries tiled along the sequence, K/V fused --------
        q_block = _pick_block(Lq, max_q_block)
        nq = Lq // q_block
        wq = p["wq"].astype(cd)
        wkv = jnp.concatenate([p["wk"], p["wv"]], axis=1).astype(cd)
        bkv = jnp.concatenate([p["bk"], p["bv"]], axis=1)
        kernel = functools.partial(mha_kernel, n_heads=n_heads, head_dim=hd,
                                   compute_dtype=cd, approx=approx)
        grid = (B, nq)
        mask_spec = (pl.BlockSpec((1, q_block, Lk), lambda b, q: (b, q, 0)) if mq == Lq
                     else pl.BlockSpec((1, 1, Lk), lambda b, q: (b, 0, 0)))
        in_specs = [
            pl.BlockSpec((1, q_block, H), lambda b, q: (b, q, 0)),
            pl.BlockSpec((1, Lk, H), lambda b, q: (b, 0, 0)),
            mask_spec,
        ] + [_bcast_spec(a.shape) for a in (wq, p["bq"], wkv, bkv, wo3, bo, gam, bet)]
        out_specs = [pl.BlockSpec((1, q_block, H), lambda b, q: (b, q, 0))]
        if want_attn:
            out_specs.append(pl.BlockSpec((1, n_heads, q_block, Lk), lambda b, q: (b, 0, q, 0)))
        operands = (x_q.astype(cd), x_kv.astype(cd), mask,
                    wq, p["bq"], wkv, bkv, wo3, bo, gam, bet)
        dims = ("parallel", "parallel")

    result = pl.pallas_call(
        kernel,
        out_shape=tuple(out_shapes) if want_attn else out_shapes[0],
        grid=grid,
        in_specs=in_specs,
        out_specs=tuple(out_specs) if want_attn else out_specs[0],
        compiler_params=_compiler_params(dims),
    )(*operands)

    if want_attn:
        return result[0], result[1]
    return result, None


def ffn_layer(x, p, *, compute_dtype=jnp.float32, max_row_block=512):
    B, L, H = x.shape
    cd = compute_dtype
    rb = _pick_block(L, max_row_block)
    nr = L // rb
    w1 = p["w1"].astype(cd)
    w2 = p["w2"].astype(cd)
    kernel = functools.partial(ffn_kernel, compute_dtype=cd)
    in_specs = [pl.BlockSpec((1, rb, H), lambda b, r: (b, r, 0))] + \
               [_bcast_spec(a.shape) for a in (w1, p["b1"], w2, p["b2"], p["ln_g"], p["ln_b"])]
    return pl.pallas_call(
        kernel,
        out_shape=jax.ShapeDtypeStruct((B, L, H), jnp.float32),
        grid=(B, nr),
        in_specs=in_specs,
        out_specs=pl.BlockSpec((1, rb, H), lambda b, r: (b, r, 0)),
        compiler_params=_compiler_params(("parallel", "parallel")),
    )(x.astype(cd), w1, p["b1"], w2, p["b2"], p["ln_g"], p["ln_b"])


def linear_layer(x, w, b, *, compute_dtype=jnp.float32, max_row_block=512):
    B, L, H = x.shape
    V = w.shape[1]
    cd = compute_dtype
    rb = _pick_block(L, max_row_block)
    nr = L // rb
    w_c = w.astype(cd)
    in_specs = [pl.BlockSpec((1, rb, H), lambda b, r: (b, r, 0)),
                _bcast_spec(w_c.shape), _bcast_spec(b.shape)]
    return pl.pallas_call(
        linear_kernel,
        out_shape=jax.ShapeDtypeStruct((B, L, V), jnp.float32),
        grid=(B, nr),
        in_specs=in_specs,
        out_specs=pl.BlockSpec((1, rb, V), lambda b, r: (b, r, 0)),
        compiler_params=_compiler_params(("parallel", "parallel")),
    )(x.astype(cd), w_c, b)


# ----------------------------------------------------------------------------
# DecoderLayer / Decoder forward
# ----------------------------------------------------------------------------
def decoder_layer(x, enc_src, trg_mask_bll, src_mask_b1l, lp, n_heads, *,
                  compute_dtype=jnp.float32, want_attn=True):
    # 1) self attention + residual + LN (attention probs not needed -> not written)
    x, _ = mha_layer(x, x, trg_mask_bll, lp["self_attn"], n_heads,
                     compute_dtype=compute_dtype, want_attn=False)
    # 2) encoder attention + residual + LN
    x, attn = mha_layer(x, enc_src, src_mask_b1l, lp["enc_attn"], n_heads,
                        compute_dtype=compute_dtype, want_attn=want_attn)
    # 3) positionwise FFN + residual + LN
    x = ffn_layer(x, lp["ffn"], compute_dtype=compute_dtype)
    return x, attn


def decoder_forward(trg_ids, enc_src, trg_mask, src_mask, params, n_heads, *,
                    compute_dtype=jnp.float32):
    """Pallas implementation of Decoder.forward (inference; dropout = identity)."""
    B, Lt = trg_ids.shape
    H = params["tok_emb"].shape[1]

    # TODO(synk): token/position embedding gather is data-dependent; performed in XLA glue
    # (a Pallas version would need scalar-prefetched ids + per-row DMA gather).
    x = (params["tok_emb"][trg_ids] * jnp.float32(math.sqrt(H))
         + params["pos_emb"][:Lt][None, :, :])

    # Compact masks: causal mask squeezed to [B, Lt, Lt]; source padding kept as [B, 1, Ls]
    # and broadcast inside the kernel (no [B, Lt, Ls] materialization / DMA).
    trg_m = trg_mask[:, 0].astype(jnp.float32)
    src_m = src_mask[:, 0].astype(jnp.float32)

    attention = None
    n_layers = len(params["layers"])
    for li, lp in enumerate(params["layers"]):
        want_attn = (li == n_layers - 1)      # module only returns the last layer's attention
        x, a = decoder_layer(x, enc_src, trg_m, src_m, lp, n_heads,
                             compute_dtype=compute_dtype, want_attn=want_attn)
        if want_attn:
            attention = a

    out = linear_layer(x, params["w_out"], params["b_out"], compute_dtype=compute_dtype)
    return out, attention


# ----------------------------------------------------------------------------
# Parameter construction (deterministic, PyTorch-style init)
# ----------------------------------------------------------------------------
def _linear_init(key, fan_in, fan_out):
    kw, kb = jax.random.split(key)
    bound = 1.0 / math.sqrt(fan_in)
    w = jax.random.uniform(kw, (fan_in, fan_out), jnp.float32, -bound, bound)
    b = jax.random.uniform(kb, (1, fan_out), jnp.float32, -bound, bound)
    return w, b


def make_mha_params(key, hid_dim):
    ks = jax.random.split(key, 4)
    wq, bq = _linear_init(ks[0], hid_dim, hid_dim)
    wk, bk = _linear_init(ks[1], hid_dim, hid_dim)
    wv, bv = _linear_init(ks[2], hid_dim, hid_dim)
    wo, bo = _linear_init(ks[3], hid_dim, hid_dim)
    return dict(wq=wq, bq=bq, wk=wk, bk=bk, wv=wv, bv=bv, wo=wo, bo=bo,
                ln_g=jnp.ones((1, hid_dim), jnp.float32),
                ln_b=jnp.zeros((1, hid_dim), jnp.float32))


def make_ffn_params(key, hid_dim, pf_dim):
    k1, k2 = jax.random.split(key)
    w1, b1 = _linear_init(k1, hid_dim, pf_dim)
    w2, b2 = _linear_init(k2, pf_dim, hid_dim)
    return dict(w1=w1, b1=b1, w2=w2, b2=b2,
                ln_g=jnp.ones((1, hid_dim), jnp.float32),
                ln_b=jnp.zeros((1, hid_dim), jnp.float32))


def make_decoder_params(key, vocab, hid_dim, n_layers, n_heads, pf_dim, max_len):
    keys = jax.random.split(key, 3 + 3 * n_layers)
    tok_emb = jax.random.normal(keys[0], (vocab, hid_dim), jnp.float32)
    pos_emb = jax.random.normal(keys[1], (max_len, hid_dim), jnp.float32)
    w_out, b_out = _linear_init(keys[2], hid_dim, vocab)
    layers = []
    for li in range(n_layers):
        k_sa, k_ea, k_ff = keys[3 + 3 * li: 6 + 3 * li]
        layers.append(dict(self_attn=make_mha_params(k_sa, hid_dim),
                           enc_attn=make_mha_params(k_ea, hid_dim),
                           ffn=make_ffn_params(k_ff, hid_dim, pf_dim)))
    return dict(tok_emb=tok_emb, pos_emb=pos_emb, layers=layers, w_out=w_out, b_out=b_out)


# ----------------------------------------------------------------------------
# Pure-JAX reference of the PyTorch forward pass (for verification)
# ----------------------------------------------------------------------------
def _ref_ln(x, g, b):
    m = x.mean(-1, keepdims=True)
    v = ((x - m) ** 2).mean(-1, keepdims=True)
    return (x - m) / jnp.sqrt(v + LN_EPS) * g + b


def _ref_mha(xq, xkv, mask4, p, n_heads):
    B, Lq, H = xq.shape
    Lk = xkv.shape[1]
    hd = H // n_heads
    Q = (xq @ p["wq"] + p["bq"]).reshape(B, Lq, n_heads, hd).transpose(0, 2, 1, 3)
    K = (xkv @ p["wk"] + p["bk"]).reshape(B, Lk, n_heads, hd).transpose(0, 2, 1, 3)
    V = (xkv @ p["wv"] + p["bv"]).reshape(B, Lk, n_heads, hd).transpose(0, 2, 1, 3)
    e = jnp.einsum("bhqd,bhkd->bhqk", Q, K) / jnp.float32(math.sqrt(hd))
    e = jnp.where(mask4 == 0, MASK_FILL, e)
    a = jax.nn.softmax(e, axis=-1)
    ctx = jnp.einsum("bhqk,bhkd->bhqd", a, V).transpose(0, 2, 1, 3).reshape(B, Lq, H)
    out = ctx @ p["wo"] + p["bo"]
    return _ref_ln(xq + out, p["ln_g"], p["ln_b"]), a


def _ref_decoder(trg_ids, enc_src, trg_mask, src_mask, params, n_heads):
    B, Lt = trg_ids.shape
    H = params["tok_emb"].shape[1]
    x = params["tok_emb"][trg_ids] * np.sqrt(H) + params["pos_emb"][:Lt][None]
    attn = None
    for lp in params["layers"]:
        x, _ = _ref_mha(x, x, trg_mask, lp["self_attn"], n_heads)
        x, attn = _ref_mha(x, enc_src, src_mask, lp["enc_attn"], n_heads)
        h = jnp.maximum(x @ lp["ffn"]["w1"] + lp["ffn"]["b1"], 0.0)
        y = h @ lp["ffn"]["w2"] + lp["ffn"]["b2"]
        x = _ref_ln(x + y, lp["ffn"]["ln_g"], lp["ffn"]["ln_b"])
    out = x @ params["w_out"] + params["b_out"]
    return out, attn


# ----------------------------------------------------------------------------
if __name__ == "__main__":
    B, TRG_LEN, SRC_LEN = 2, 8, 16
    HID_DIM, N_HEADS, PF_DIM = 32, 4, 64
    VOCAB, N_LAYERS, MAX_LEN = 50, 2, 32

    root = jax.random.PRNGKey(0)
    k_ids, k_enc, k_par = jax.random.split(root, 3)

    trg_ids = jax.random.randint(k_ids, (B, TRG_LEN), 0, VOCAB)
    enc_src = jax.random.normal(k_enc, (B, SRC_LEN, HID_DIM), jnp.float32)

    # Causal target mask [B, 1, Lt, Lt]; source padding mask [B, 1, 1, Ls]
    trg_mask = jnp.tril(jnp.ones((TRG_LEN, TRG_LEN), jnp.float32))[None, None]
    trg_mask = jnp.broadcast_to(trg_mask, (B, 1, TRG_LEN, TRG_LEN))
    src_valid = jnp.concatenate(
        [jnp.ones((B, SRC_LEN - 3), jnp.float32), jnp.zeros((B, 3), jnp.float32)], axis=-1)
    src_mask = src_valid[:, None, None, :]

    params = make_decoder_params(k_par, VOCAB, HID_DIM, N_LAYERS, N_HEADS, PF_DIM, MAX_LEN)

    # f32 path (tight verification against the pure-JAX reference of the PyTorch forward)
    out, attention = decoder_forward(trg_ids, enc_src, trg_mask, src_mask, params, N_HEADS)
    out = jax.block_until_ready(out)
    attention = jax.block_until_ready(attention)

    ref_out, ref_attn = _ref_decoder(trg_ids, enc_src, trg_mask, src_mask, params, N_HEADS)
    np.testing.assert_allclose(np.asarray(out), np.asarray(ref_out), atol=1e-4, rtol=1e-4)
    np.testing.assert_allclose(np.asarray(attention), np.asarray(ref_attn), atol=1e-4, rtol=1e-4)

    # bf16 MXU fast path (f32 accumulation / stats); loose tolerance sanity check
    out_bf16, _ = decoder_forward(trg_ids, enc_src, trg_mask, src_mask, params, N_HEADS,
                                  compute_dtype=jnp.bfloat16)
    out_bf16 = jax.block_until_ready(out_bf16)
    np.testing.assert_allclose(np.asarray(out_bf16), np.asarray(ref_out), atol=0.15, rtol=0.15)

    print("KERNEL_OK")
</pallas_src>

<mosaic_0001>
module attributes {stable_mosaic.version = 11 : i64} {
  func.func @mha_self_fused_kernel(%arg0: i32, %arg1: memref<1x8x32xf32, #tpu.memory_space<vmem>>, %arg2: memref<1x8x8xf32, #tpu.memory_space<vmem>>, %arg3: memref<32x96xf32, #tpu.memory_space<vmem>>, %arg4: memref<1x96xf32, #tpu.memory_space<vmem>>, %arg5: memref<4x8x32xf32, #tpu.memory_space<vmem>>, %arg6: memref<1x32xf32, #tpu.memory_space<vmem>>, %arg7: memref<1x32xf32, #tpu.memory_space<vmem>>, %arg8: memref<1x32xf32, #tpu.memory_space<vmem>>, %arg9: memref<1x8x32xf32, #tpu.memory_space<vmem>>) attributes {dimension_semantics = [#tpu.dimension_semantics<parallel>], iteration_bounds = array<i64: 2>, scalar_prefetch = 0 : i64, scratch_operands = 0 : i64, tpu.core_type = #tpu.core_type<tc>, window_params = [{transform_indices = @transform_0, window_bounds = array<i64: 1, 8, 32>}, {transform_indices = @transform_1, window_bounds = array<i64: 1, 8, 8>}, {pipeline_mode = #tpu.pipeline_mode<synchronous>, transform_indices = @transform_2, window_bounds = array<i64: 32, 96>}, {pipeline_mode = #tpu.pipeline_mode<synchronous>, transform_indices = @transform_3, window_bounds = array<i64: 1, 96>}, {pipeline_mode = #tpu.pipeline_mode<synchronous>, transform_indices = @transform_4, window_bounds = array<i64: 4, 8, 32>}, {pipeline_mode = #tpu.pipeline_mode<synchronous>, transform_indices = @transform_5, window_bounds = array<i64: 1, 32>}, {pipeline_mode = #tpu.pipeline_mode<synchronous>, transform_indices = @transform_6, window_bounds = array<i64: 1, 32>}, {pipeline_mode = #tpu.pipeline_mode<synchronous>, transform_indices = @transform_7, window_bounds = array<i64: 1, 32>}, {transform_indices = @transform_8, window_bounds = array<i64: 1, 8, 32>}]} {
    %c0 = arith.constant 0 : index
    %c0_0 = arith.constant 0 : index
    %c0_1 = arith.constant 0 : index
    %0 = vector.load %arg1[%c0, %c0_0, %c0_1] : memref<1x8x32xf32, #tpu.memory_space<vmem>>, vector<1x8x32xf32>
    %1 = vector.shape_cast %0 : vector<1x8x32xf32> to vector<8x32xf32>
    %c0_2 = arith.constant 0 : index
    %c0_3 = arith.constant 0 : index
    %2 = vector.load %arg3[%c0_2, %c0_3] : memref<32x96xf32, #tpu.memory_space<vmem>>, vector<32x96xf32>
    %cst = arith.constant dense<0.000000e+00> : vector<8x96xf32>
    %3 = tpu.matmul %1, %2, %cst {dimension_numbers = #tpu.dot_dimension_numbers<[1], [0], [0], [1], [0, 0, 1, 1], [], []>} : vector<8x32xf32>, vector<32x96xf32>, vector<8x96xf32> -> vector<8x96xf32>
    %c0_4 = arith.constant 0 : index
    %c0_5 = arith.constant 0 : index
    %4 = vector.load %arg4[%c0_4, %c0_5] : memref<1x96xf32, #tpu.memory_space<vmem>>, vector<1x96xf32>
    %5 = vector.broadcast %4 : vector<1x96xf32> to vector<8x96xf32>
    %6 = arith.addf %3, %5 : vector<8x96xf32>
    %7 = vector.extract_strided_slice %6 {offsets = [0, 0], sizes = [8, 8], strides = [1, 1]} : vector<8x96xf32> to vector<8x8xf32>
    %8 = vector.extract_strided_slice %6 {offsets = [0, 8], sizes = [8, 8], strides = [1, 1]} : vector<8x96xf32> to vector<8x8xf32>
    %9 = vector.extract_strided_slice %6 {offsets = [0, 16], sizes = [8, 8], strides = [1, 1]} : vector<8x96xf32> to vector<8x8xf32>
    %10 = vector.extract_strided_slice %6 {offsets = [0, 24], sizes = [8, 8], strides = [1, 1]} : vector<8x96xf32> to vector<8x8xf32>
    %11 = vector.shape_cast %7 : vector<8x8xf32> to vector<1x8x8xf32>
    %12 = vector.shape_cast %8 : vector<8x8xf32> to vector<1x8x8xf32>
    %13 = vector.shape_cast %9 : vector<8x8xf32> to vector<1x8x8xf32>
    %14 = vector.shape_cast %10 : vector<8x8xf32> to vector<1x8x8xf32>
    %15 = tpu.concatenate %11, %12, %13, %14 in 0 : vector<1x8x8xf32>, vector<1x8x8xf32>, vector<1x8x8xf32>, vector<1x8x8xf32> -> vector<4x8x8xf32>
    %16 = vector.extract_strided_slice %6 {offsets = [0, 32], sizes = [8, 8], strides = [1, 1]} : vector<8x96xf32> to vector<8x8xf32>
    %17 = vector.extract_strided_slice %6 {offsets = [0, 40], sizes = [8, 8], strides = [1, 1]} : vector<8x96xf32> to vector<8x8xf32>
    %18 = vector.extract_strided_slice %6 {offsets = [0, 48], sizes = [8, 8], strides = [1, 1]} : vector<8x96xf32> to vector<8x8xf32>
    %19 = vector.extract_strided_slice %6 {offsets = [0, 56], sizes = [8, 8], strides = [1, 1]} : vector<8x96xf32> to vector<8x8xf32>
    %20 = vector.shape_cast %16 : vector<8x8xf32> to vector<1x8x8xf32>
    %21 = vector.shape_cast %17 : vector<8x8xf32> to vector<1x8x8xf32>
    %22 = vector.shape_cast %18 : vector<8x8xf32> to vector<1x8x8xf32>
    %23 = vector.shape_cast %19 : vector<8x8xf32> to vector<1x8x8xf32>
    %24 = tpu.concatenate %20, %21, %22, %23 in 0 : vector<1x8x8xf32>, vector<1x8x8xf32>, vector<1x8x8xf32>, vector<1x8x8xf32> -> vector<4x8x8xf32>
    %25 = vector.extract_strided_slice %6 {offsets = [0, 64], sizes = [8, 8], strides = [1, 1]} : vector<8x96xf32> to vector<8x8xf32>
    %26 = vector.extract_strided_slice %6 {offsets = [0, 72], sizes = [8, 8], strides = [1, 1]} : vector<8x96xf32> to vector<8x8xf32>
    %27 = vector.extract_strided_slice %6 {offsets = [0, 80], sizes = [8, 8], strides = [1, 1]} : vector<8x96xf32> to vector<8x8xf32>
    %28 = vector.extract_strided_slice %6 {offsets = [0, 88], sizes = [8, 8], strides = [1, 1]} : vector<8x96xf32> to vector<8x8xf32>
    %29 = vector.shape_cast %25 : vector<8x8xf32> to vector<1x8x8xf32>
    %30 = vector.shape_cast %26 : vector<8x8xf32> to vector<1x8x8xf32>
    %31 = vector.shape_cast %27 : vector<8x8xf32> to vector<1x8x8xf32>
    %32 = vector.shape_cast %28 : vector<8x8xf32> to vector<1x8x8xf32>
    %33 = tpu.concatenate %29, %30, %31, %32 in 0 : vector<1x8x8xf32>, vector<1x8x8xf32>, vector<1x8x8xf32>, vector<1x8x8xf32> -> vector<4x8x8xf32>
    %c0_6 = arith.constant 0 : index
    %c0_7 = arith.constant 0 : index
    %c0_8 = arith.constant 0 : index
    %34 = vector.load %arg2[%c0_6, %c0_7, %c0_8] : memref<1x8x8xf32, #tpu.memory_space<vmem>>, vector<1x8x8xf32>
    %35 = vector.shape_cast %34 : vector<1x8x8xf32> to vector<8x8xf32>
    %c0_9 = arith.constant 0 : index
    %c0_10 = arith.constant 0 : index
    %c0_11 = arith.constant 0 : index
    %36 = vector.load %arg5[%c0_9, %c0_10, %c0_11] : memref<4x8x32xf32, #tpu.memory_space<vmem>>, vector<4x8x32xf32>
    %c0_12 = arith.constant 0 : index
    %c0_13 = arith.constant 0 : index
    %37 = vector.load %arg6[%c0_12, %c0_13] : memref<1x32xf32, #tpu.memory_space<vmem>>, vector<1x32xf32>
    %c0_14 = arith.constant 0 : index
    %c0_15 = arith.constant 0 : index
    %38 = vector.load %arg7[%c0_14, %c0_15] : memref<1x32xf32, #tpu.memory_space<vmem>>, vector<1x32xf32>
    %c0_16 = arith.constant 0 : index
    %c0_17 = arith.constant 0 : index
    %39 = vector.load %arg8[%c0_16, %c0_17] : memref<1x32xf32, #tpu.memory_space<vmem>>, vector<1x32xf32>
    "tpu.trace_start"() <{level = 10 : i32, message = "hqd,hkd->hqk"}> : () -> ()
    %cst_18 = arith.constant dense<0.000000e+00> : vector<4x8x8xf32>
    %40 = tpu.matmul %15, %24, %cst_18 {dimension_numbers = #tpu.dot_dimension_numbers<[2], [2], [1], [1], [0, 0, 0, 1, 1, 1], [0], [0]>} : vector<4x8x8xf32>, vector<4x8x8xf32>, vector<4x8x8xf32> -> vector<4x8x8xf32>
    "tpu.trace_stop"() : () -> ()
    %cst_19 = arith.constant 2.82842708 : f32
    %41 = vector.broadcast %cst_19 : f32 to vector<4x8x8xf32>
    %42 = arith.divf %40, %41 : vector<4x8x8xf32>
    %43 = vector.shape_cast %35 : vector<8x8xf32> to vector<1x8x8xf32>
    %cst_20 = arith.constant 0.000000e+00 : f32
    %44 = vector.broadcast %cst_20 : f32 to vector<1x8x8xf32>
    %45 = arith.cmpf oeq, %43, %44 : vector<1x8x8xf32>
    %cst_21 = arith.constant -1.000000e+10 : f32
    %46 = vector.shape_cast %45 : vector<1x8x8xi1> to vector<1x8x8xi1>
    %47 = vector.broadcast %46 : vector<1x8x8xi1> to vector<4x8x8xi1>
    %48 = vector.broadcast %cst_21 : f32 to vector<4x8x8xf32>
    %49 = arith.select %47, %48, %42 : vector<4x8x8xi1>, vector<4x8x8xf32>
    %cst_22 = arith.constant dense<0xFF800000> : vector<4x8xf32>
    %50 = vector.multi_reduction <maximumf>, %49, %cst_22 [2] : vector<4x8x8xf32> to vector<4x8xf32>
    %51 = vector.shape_cast %50 : vector<4x8xf32> to vector<4x8x1xf32>
    %52 = vector.broadcast %51 : vector<4x8x1xf32> to vector<4x8x8xf32>
    %53 = arith.subf %49, %52 : vector<4x8x8xf32>
    %54 = math.exp %53 : vector<4x8x8xf32>
    %cst_23 = arith.constant dense<0.000000e+00> : vector<4x8xf32>
    %55 = vector.multi_reduction <add>, %54, %cst_23 [2] : vector<4x8x8xf32> to vector<4x8xf32>
    %56 = vector.shape_cast %55 : vector<4x8xf32> to vector<4x8x1xf32>
    %57 = vector.broadcast %56 : vector<4x8x1xf32> to vector<4x8x8xf32>
    %58 = arith.divf %54, %57 : vector<4x8x8xf32>
    "tpu.trace_start"() <{level = 10 : i32, message = "hqk,hkd->hqd"}> : () -> ()
    %cst_24 = arith.constant dense<0.000000e+00> : vector<4x8x8xf32>
    %59 = tpu.matmul %58, %33, %cst_24 {dimension_numbers = #tpu.dot_dimension_numbers<[2], [1], [1], [2], [0, 0, 0, 1, 1, 2], [0], [0]>} : vector<4x8x8xf32>, vector<4x8x8xf32>, vector<4x8x8xf32> -> vector<4x8x8xf32>
    "tpu.trace_stop"() : () -> ()
    "tpu.trace_start"() <{level = 10 : i32, message = "hqd,hdo->hqo"}> : () -> ()
    %cst_25 = arith.constant dense<0.000000e+00> : vector<4x8x32xf32>
    %60 = tpu.matmul %59, %36, %cst_25 {dimension_numbers = #tpu.dot_dimension_numbers<[2], [1], [1], [2], [0, 0, 0, 1, 1, 2], [0], [0]>} : vector<4x8x8xf32>, vector<4x8x32xf32>, vector<4x8x32xf32> -> vector<4x8x32xf32>
    "tpu.trace_stop"() : () -> ()
    %cst_26 = arith.constant dense<0.000000e+00> : vector<8x32xf32>
    %61 = vector.multi_reduction <add>, %60, %cst_26 [0] : vector<4x8x32xf32> to vector<8x32xf32>
    %62 = vector.broadcast %37 : vector<1x32xf32> to vector<8x32xf32>
    %63 = arith.addf %61, %62 : vector<8x32xf32>
    %64 = arith.addf %1, %63 : vector<8x32xf32>
    %cst_27 = arith.constant dense<0.000000e+00> : vector<8xf32>
    %65 = vector.multi_reduction <add>, %64, %cst_27 [1] : vector<8x32xf32> to vector<8xf32>
    %66 = vector.shape_cast %65 : vector<8xf32> to vector<8x1xf32>
    %cst_28 = arith.constant 3.200000e+01 : f32
    %67 = vector.broadcast %cst_28 : f32 to vector<8x1xf32>
    %68 = arith.divf %66, %67 : vector<8x1xf32>
    %69 = vector.broadcast %68 : vector<8x1xf32> to vector<8x32xf32>
    %70 = arith.subf %64, %69 : vector<8x32xf32>
    %71 = arith.mulf %70, %70 : vector<8x32xf32>
    %cst_29 = arith.constant dense<0.000000e+00> : vector<8xf32>
    %72 = vector.multi_reduction <add>, %71, %cst_29 [1] : vector<8x32xf32> to vector<8xf32>
    %73 = vector.shape_cast %72 : vector<8xf32> to vector<8x1xf32>
    %cst_30 = arith.constant 3.200000e+01 : f32
    %74 = vector.broadcast %cst_30 : f32 to vector<8x1xf32>
    %75 = arith.divf %73, %74 : vector<8x1xf32>
    %76 = vector.broadcast %68 : vector<8x1xf32> to vector<8x32xf32>
    %77 = arith.subf %64, %76 : vector<8x32xf32>
    %cst_31 = arith.constant 9.99999974E-6 : f32
    %78 = vector.broadcast %cst_31 : f32 to vector<8x1xf32>
    %79 = arith.addf %75, %78 : vector<8x1xf32>
    %80 = math.rsqrt %79 : vector<8x1xf32>
    %81 = vector.broadcast %80 : vector<8x1xf32> to vector<8x32xf32>
    %82 = arith.mulf %77, %81 : vector<8x32xf32>
    %83 = vector.broadcast %38 : vector<1x32xf32> to vector<8x32xf32>
    %84 = arith.mulf %82, %83 : vector<8x32xf32>
    %85 = vector.broadcast %39 : vector<1x32xf32> to vector<8x32xf32>
    %86 = arith.addf %84, %85 : vector<8x32xf32>
    %c0_32 = arith.constant 0 : index
    %c0_33 = arith.constant 0 : index
    %c0_34 = arith.constant 0 : index
    %87 = vector.load %arg9[%c0_32, %c0_33, %c0_34] : memref<1x8x32xf32, #tpu.memory_space<vmem>>, vector<1x8x32xf32>
    %88 = vector.shape_cast %87 : vector<1x8x32xf32> to vector<8x32xf32>
    %89 = vector.shape_cast %86 : vector<8x32xf32> to vector<1x8x32xf32>
    tpu.vector_store %arg9[%c0_32, %c0_33, %c0_34], %89 {strides = array<i32>} : memref<1x8x32xf32, #tpu.memory_space<vmem>>, vector<1x8x32xf32>,
    return
  }
  func.func @transform_0(%arg0: i32) -> (i32, i32, i32) {
    %c0_i32 = arith.constant 0 : i32
    %c0_i32_0 = arith.constant 0 : i32
    %c0_i32_1 = arith.constant 0 : i32
    return %arg0, %c0_i32, %c0_i32_0 : i32, i32, i32
  }
  func.func @transform_1(%arg0: i32) -> (i32, i32, i32) {
    %c0_i32 = arith.constant 0 : i32
    %c0_i32_0 = arith.constant 0 : i32
    %c0_i32_1 = arith.constant 0 : i32
    return %arg0, %c0_i32, %c0_i32_0 : i32, i32, i32
  }
  func.func @transform_2(%arg0: i32) -> (i32, i32) {
    %c0_i32 = arith.constant 0 : i32
    %c0_i32_0 = arith.constant 0 : i32
    %c0_i32_1 = arith.constant 0 : i32
    return %c0_i32, %c0_i32_0 : i32, i32
  }
  func.func @transform_3(%arg0: i32) -> (i32, i32) {
    %c0_i32 = arith.constant 0 : i32
    %c0_i32_0 = arith.constant 0 : i32
    %c0_i32_1 = arith.constant 0 : i32
    return %c0_i32, %c0_i32_0 : i32, i32
  }
  func.func @transform_4(%arg0: i32) -> (i32, i32, i32) {
    %c0_i32 = arith.constant 0 : i32
    %c0_i32_0 = arith.constant 0 : i32
    %c0_i32_1 = arith.constant 0 : i32
    %c0_i32_2 = arith.constant 0 : i32
    return %c0_i32, %c0_i32_0, %c0_i32_1 : i32, i32, i32
  }
  func.func @transform_5(%arg0: i32) -> (i32, i32) {
    %c0_i32 = arith.constant 0 : i32
    %c0_i32_0 = arith.constant 0 : i32
    %c0_i32_1 = arith.constant 0 : i32
    return %c0_i32, %c0_i32_0 : i32, i32
  }
  func.func @transform_6(%arg0: i32) -> (i32, i32) {
    %c0_i32 = arith.constant 0 : i32
    %c0_i32_0 = arith.constant 0 : i32
    %c0_i32_1 = arith.constant 0 : i32
    return %c0_i32, %c0_i32_0 : i32, i32
  }
  func.func @transform_7(%arg0: i32) -> (i32, i32) {
    %c0_i32 = arith.constant 0 : i32
    %c0_i32_0 = arith.constant 0 : i32
    %c0_i32_1 = arith.constant 0 : i32
    return %c0_i32, %c0_i32_0 : i32, i32
  }
  func.func @transform_8(%arg0: i32) -> (i32, i32, i32) {
    %c0_i32 = arith.constant 0 : i32
    %c0_i32_0 = arith.constant 0 : i32
    %c0_i32_1 = arith.constant 0 : i32
    return %arg0, %c0_i32, %c0_i32_0 : i32, i32, i32
  }
}

</mosaic_0001>

<bundles_post_ra>
// kernel: tpu_custom_call.1
= control target key start
LH: loop header
LB: loop body
LE: loop exit
PB: predicated region body
PF: predicated region fallthrough
CT: control target
= control target key end

     0   :  { %s2438_s0 = inlined_call_operand.hbm [shape: f32[2,8,32], index: 0, kind: input, shape index: {}]   ;;  %s2439_s1 = inlined_call_operand.hbm [shape: f32[2,8,8], index: 1, kind: input, shape index: {}]   ;;  %s2440_s2 = inlined_call_operand.hbm [shape: f32[32,96], index: 2, kind: input, shape index: {}]   ;;  %s2441_s3 = inlined_call_operand.vmem [shape: f32[1,96], index: 3, kind: input, shape index: {}]   ;;  %s2442_s4 = inlined_call_operand.hbm [shape: f32[4,8,32], index: 4, kind: input, shape index: {}]   ;;  %s2443_s5 = inlined_call_operand.vmem [shape: f32[1,32], index: 5, kind: input, shape index: {}]   ;;  %s2444_s6 = inlined_call_operand.vmem [shape: f32[1,32], index: 6, kind: input, shape index: {}]   ;;  %s2445_s7 = inlined_call_operand.vmem [shape: f32[1,32], index: 7, kind: input, shape index: {}]   ;;  %s2446_s8 = inlined_call_operand.hbm [shape: f32[2,8,32], index: 8, kind: output, shape index: {}]  }
   0x1   :  { %2454 = sst [smem:[#allocation19_spill]] %s2440_s2 }
   0x2   :  { %2455 = sst [smem:[#allocation20_spill]] %s2442_s4 }
   0x3   :  { %13 = vsyncpa [#allocation3], 0 }
   0x4   :  { %15 = vsyncpa [#allocation3 + $0x1], 0 }
   0x5   :  { %16 = vsyncpa [#allocation6], 0 }
   0x6   :  { %18 = vsyncpa [#allocation6 + $0x1], 0 }
   0x7   :  { %19 = vsyncpa [#allocation9], 0 }
   0x8   :  { %20 = vsyncpa [#allocation4], 0 }
   0x9   :  { %22 = vsyncpa [#allocation4 + $0x1], 0  ;;  %s2099_s27 = smov 0   ;;  %s2101_s28 = smov 0  }
   0xa   :  { %s2103_s29 = smov 0   ;;  %s2105_s30 = smov 0  }
   0xb LB: > { %2456 = sst [smem:[#allocation16_spill]] %s2034_s29  ;;  %s2120_s9 = sadd.s32 4294967295, %s2038_s30   ;;  %s2038_s30 = sphi %s2105_s30, %s2477_s30   ;;  %s2034_s29 = sphi %s2103_s29, %s2479_s29   ;;  %s2030_s28 = sphi %s2101_s28, %s2481_s28   ;;  %s2026_s27 = sphi %s2099_s27, %s2480_s27  }
   0xc   : > { %s1615_s10 = sadd.s32 4294967294, %s2038_s30   ;;  %p48_p0 = scmp.ne.s32.totalorder %s2030_s28, %s2026_s27 }
   0xd   : > { %p2447_p1 = scmp.eq.s32.totalorder %s2120_s9, 0  ;;  %p230_p3 = scmp.eq.s32.totalorder %s1615_s10, 1 }
   0xe   : > { %p1616_p5 = scmp.ge.s32.totalorder %s2038_s30, 1  ;;  %p237_p7 = scmp.lt.s32.totalorder %s2038_s30, 3 }
   0xf   : > { %p2129_p4 = por %p2447_p1, %p48_p0  ;;  %p2134_p6 = por %p230_p3, %p48_p0 }
  0x10   : > { %p2139_p8 = pnand %p1616_p5, %p237_p7  ;;  %s2040_s14 = smov [#allocation7]  }
  0x11   : > { %s2457_s11 = scalar_select %p2129_p4, 1, 0 }
  0x12   : > { %s2458_s12 = scalar_select %p2134_p6, 1, 0 }
  0x13   : > { %s2459_s13 = scalar_select %p2139_p8, 1, 0 }
  0x14   : > { %s249_s15 = sshll.u32 %s2040_s14, 4  ;;  %p1769_p9 = pneg %p2139_p8  ;;  %s250_s15 = int_to_ptr.vmem [resolvable:$true] %s249_s15 }
  0x15   : > { %s2041_s17 = smov [#allocation8]   ;;  %s1865_s19 = scalar_lea.vmem %s250_s15, 512 }
  0x16   : > { %p2148_p11 = pnand %p1769_p9, %p2447_p1  ;;  %s265_s18 = sshll.u32 %s2041_s17, 4  ;;  %s266_s18 = int_to_ptr.vmem [resolvable:$true] %s265_s18 }
  0x17   : > { %p1866_p13 = scmp.ne.s32.totalorder %s250_s15, %s1865_s19  ;;  %p1873_p5 = scmp.lt.s32.totalorder %s250_s15, %s250_s15 }
  0x18   : > { %p1856_p12 = pneg %p2148_p11  ;;  %p1874_p7 = scmp.lt.s32.totalorder %s1865_s19, %s1865_s19 }
  0x1a   : > { %p1868_p0 = pnand %p1866_p13, %p1856_p12  ;;  %p1875_p10 = por %p1874_p7, %p1873_p5 }
  0x1c   : > { %p1869_p3 = pneg %p1868_p0 }
  0x1e   : > { %p1876_p9 = pnand %p1875_p10, %p1869_p3 }
  0x20   : > { %1879 = shalt.err (!%p1876_p9)
}
  0x21   : > { %s2042_s20 = smov 128   ;;  %s2043_s21 = smov 8  }
  0x22   : > { %s2461_s2 = sld [smem:[#allocation19_spill]]  ;;  %s1891_s24 = scalar_lea.vmem %s266_s18, 512 }
  0x23   : > { %p1892_p1 = scmp.ne.s32.totalorder %s266_s18, %s1891_s24  ;;  %p1899_p2 = scmp.lt.s32.totalorder %s266_s18, %s266_s18 }
  0x24   : > { %p1900_p6 = scmp.lt.s32.totalorder %s1891_s24, %s1891_s24 }
  0x25   : > { %p1894_p13 = pnand %p1892_p1, %p1856_p12 }
  0x26   : > { %p1901_p5 = por %p1900_p6, %p1899_p2 }
  0x27   : > { %p1895_p0 = pneg %p1894_p13 }
  0x28   : > { %1772 = dma.hbm_to_vmem [thread:$0]  (!%p2148_p11), %s2461_s2, 512, %s250_s15, [#allocation6], %s2042_s20, %s2042_s20, %s2043_s21  }
  0x29   : > { %p1902_p10 = pnand %p1901_p5, %p1895_p0 }
  0x2b   : > { %1905 = shalt.err (!%p1902_p10)
}
  0x2c   : > { %s2462_s4 = sld [smem:[#allocation20_spill]]  ;;  %s2171_s10 = sadd.s32 1, %s2038_s30  }
  0x2d   : > { %2463 = sst [smem:[#allocation17_spill]] %s2171_s10  ;;  %s35_s14 = sadd.s32 1, %s2034_s29 }
  0x2e   : > { %s32_s15 = ssub.s32 %s2038_s30, %s2171_s10  ;;  %p42_p1 = scmp.ne.s32.totalorder %s2034_s29, %s2030_s28 }
  0x2f   : > { %p33_p2 = scmp.eq.s32.totalorder %s32_s15, 0  ;;  %p43_p6 = scmp.eq.s32.totalorder %s2038_s30, 0 }
  0x30   : > { %p2464_p12 = scmp.eq.s32.totalorder %s2120_s9, 1  ;;  %p1789_p7 = scmp.lt.s32.totalorder %s2038_s30, 2 }
  0x31   : > { %s2187_s17 = scalar_select %p33_p2, %s2034_s29, %s35_s14  }
  0x32   : > { %1775 = dma.hbm_to_vmem [thread:$0]  (!%p2148_p11), %s2462_s4, 512, %s266_s18, [#allocation9], %s2042_s20, %s2042_s20, %s2043_s21  }
  0x33   : > { %p2181_p3 = por %p2464_p12, %p42_p1  ;;  %2466 = sst [smem:[#allocation18_spill]] %s2187_s17 }
  0x34   : > { %p44_p9 = por %p43_p6, %p42_p1  ;;  %s288_s19 = sand.u32 1, %s2034_s29  }
  0x35   : > { %s2465_s16 = scalar_select %p2181_p3, 1, 0 }
  0x36   : > { %s2190_s18 = sshll.u32 %s288_s19, 3  ;;  %s1621_s20 = sshll.u32 %s2038_s30, 7 }
  0x37   : > { %s2196_s23 = scalar_lea.hbm %s2438_s0, %s1621_s20  ;;  %s292_s24 = scalar_lea.vmem [#allocation2], %s2190_s18 }
  0x38   : > { %s299_s25 = sshll.u32 %s292_s24, 4  ;;  %p2201_p11 = pnand %p1789_p7, %p44_p9  ;;  %s2199_s25 = int_to_ptr.vmem [resolvable:$true] %s299_s25 }
  0x39   : > { %s2208_s2 = scalar_lea.hbm %s2439_s1, %s1621_s20  ;;  %s306_s21 = sand.u32 1, %s2038_s30  }
  0x3a   : > { %s289_s22 = scalar_lea.sflag [#allocation3], %s288_s19  ;;  %s1906_s4 = scalar_lea.hbm %s2196_s23, 128 }
  0x3b   : > { %p1907_p13 = scmp.ne.s32.totalorder %s2196_s23, %s1906_s4  ;;  %p1908_p0 = pneg %p2201_p11 }
  0x3c   : > { %s1911_s29 = scalar_lea.hbm %s2438_s0, 256  ;;  %p1912_p1 = scmp.lt.s32.totalorder %s2196_s23, %s2438_s0 }
  0x3d   : > { %p1909_p5 = pnand %p1908_p0, %p1907_p13  ;;  %p1913_p2 = scmp.lt.s32.totalorder %s1911_s29, %s1906_s4 }
  0x3f   : > { %p1910_p10 = pneg %p1909_p5  ;;  %p1914_p6 = por %p1913_p2, %p1912_p1 }
  0x41   : > { %p1915_p12 = pnand %p1914_p6, %p1910_p10 }
  0x43   : > { %1918 = shalt.err (!%p1915_p12)
}
  0x44   : > { %s1919_s19 = scalar_lea.vmem %s2199_s25, 128  ;;  %s2044_s17 = smov [#allocation2]  }
  0x45   : > { %p1920_p7 = scmp.ne.s32.totalorder %s2199_s25, %s1919_s19  ;;  %s1924_s20 = sshll.u32 %s2044_s17, 4  ;;  %s1925_s20 = int_to_ptr.vmem [resolvable:$false] %s1924_s20 }
  0x46   : > { %s1926_s15 = scalar_lea.vmem %s1925_s20, 256  ;;  %p1927_p5 = scmp.lt.s32.totalorder %s2199_s25, %s1925_s20 }
  0x47   : > { %p1922_p9 = pnand %p1920_p7, %p1908_p0  ;;  %p1928_p3 = scmp.lt.s32.totalorder %s1926_s15, %s1919_s19 }
  0x49   : > { %p1923_p13 = pneg %p1922_p9  ;;  %p1929_p4 = por %p1928_p3, %p1927_p5 }
  0x4b   : > { %p1930_p1 = pnand %p1929_p4, %p1923_p13 }
  0x4d   : > { %1933 = shalt.err (!%p1930_p1)
}
  0x4e   : > { %1779 = dma.hbm_to_vmem [thread:$0]  (!%p2201_p11), %s2196_s23, 128, %s2199_s25, %s289_s22  }
  0x4f   : > { %s310_s4 = scalar_lea.vmem [#allocation5], %s2190_s18  ;;  %s307_s10 = scalar_lea.sflag [#allocation6], %s306_s21 }
  0x50   : > { %s317_s29 = sshll.u32 %s310_s4, 4  ;;  %s1934_s24 = scalar_lea.hbm %s2208_s2, 128  ;;  %s318_s29 = int_to_ptr.vmem [resolvable:$true] %s317_s29 }
  0x51   : > { %p1935_p3 = scmp.ne.s32.totalorder %s2208_s2, %s1934_s24  ;;  %s1939_s17 = scalar_lea.hbm %s2439_s1, 256 }
  0x52   : > { %p1940_p2 = scmp.lt.s32.totalorder %s2208_s2, %s2439_s1  ;;  %p1941_p6 = scmp.lt.s32.totalorder %s1939_s17, %s1934_s24 }
  0x53   : > { %p1937_p4 = pnand %p1935_p3, %p1908_p0 }
  0x54   : > { %p1942_p12 = por %p1941_p6, %p1940_p2 }
  0x55   : > { %p1938_p10 = pneg %p1937_p4 }
  0x57   : > { %p1943_p7 = pnand %p1942_p12, %p1938_p10 }
  0x59   : > { %1946 = shalt.err (!%p1943_p7)
}
  0x5a   : > { %s1947_s18 = scalar_lea.vmem %s318_s29, 128  ;;  %s2045_s23 = smov [#allocation5]  }
  0x5b   : > { %p1948_p9 = scmp.ne.s32.totalorder %s318_s29, %s1947_s18  ;;  %s1952_s25 = sshll.u32 %s2045_s23, 4  ;;  %s1953_s25 = int_to_ptr.vmem [resolvable:$false] %s1952_s25 }
  0x5c   : > { %s1954_s21 = scalar_lea.vmem %s1953_s25, 256  ;;  %p1955_p1 = scmp.lt.s32.totalorder %s318_s29, %s1953_s25 }
  0x5d   : > { %p1950_p13 = pnand %p1948_p9, %p1908_p0  ;;  %p1956_p3 = scmp.lt.s32.totalorder %s1954_s21, %s1947_s18 }
  0x5f   : > { %p1951_p5 = pneg %p1950_p13  ;;  %p1957_p4 = por %p1956_p3, %p1955_p1 }
  0x61   : > { %p1958_p8 = pnand %p1957_p4, %p1951_p5 }
  0x63   : > { %1961 = shalt.err (!%p1958_p8)
}
  0x64   : > { %1782 = dma.hbm_to_vmem [thread:$0]  (!%p2201_p11), %s2208_s2, 128, %s318_s29, %s307_s10  }
  0x65   : > { %p2468_p10 = scmp.ne.s32.totalorder %s2459_s13, 0 }
  0x66   : > { %s2259_s22 = sand.u32 (!%p2468_p10), 1, %s2030_s28   ;;  %p2469_p0 = scmp.ne.s32.totalorder (!%p2468_p10), %s2457_s11, 0 }
  0x67   : > { %326 = sbr.rel (%p2468_p10) target bundleno = 1785 (0x6f9), region = 52  ;;  %s2262_s4 = sshll.u32 (!%p2468_p10), %s2259_s22, 3 }
  0x68   : > { %s329_s24 = scalar_lea.sflag (!%p2468_p10), [#allocation3], %s2259_s22  ;;  %s332_s14 = scalar_lea.vmem (!%p2468_p10), [#allocation2], %s2262_s4 }
  0x6c   : > { %2005 = dma.done.wait (%p2469_p0), %s329_s24, 128  }
  0x6d   : > { %2007 = vsyncadd (%p2469_p0), %s329_s24, 4294967168  ;;  %s337_s2 = sand.u32 1, %s2120_s9   ;;  %s341_s26 = scalar_lea.vmem [#allocation5], %s2262_s4 }
  0x6e   : > { %s338_s13 = scalar_lea.sflag [#allocation6], %s337_s2 }
  0x6f   : > { %2009 = dma.done.wait (%p2469_p0), %s338_s13, 128  }
  0x70   : > { %2011 = vsyncadd (%p2469_p0), %s338_s13, 4294967168  ;;  %p2470_p8 = scmp.eq.s32.totalorder %s2120_s9, 0 }
  0x72   : > { %2013 = dma.done.wait (%p2470_p8), [#allocation6], 512   ;;  %p2471_p11 = pmov %p2470_p8 }
  0x73   : > { %p2472_p2 = pmov %p2470_p8 }
  0x74   : > { %2015 = vsyncadd (%p2471_p11), [#allocation6], 4294966784 }
  0x75   : > { %2017 = dma.done.wait (%p2472_p2), [#allocation9], 512   ;;  %p2473_p6 = pmov %p2472_p2 }
  0x76   : > { %v2046_v0 = vmov 0.0   ;;  %vm2047_vm0 = vmmov 0   ;;  %v391_v1 = vld [vmem:[#allocation7 + $0x18] sm:$0xff]  ;;  %v390_v2 = vld [vmem:[#allocation7 + $0x10] sm:$0xff]  ;;  %v389_v3 = vld [vmem:[#allocation7 + $0x8] sm:$0xff]  ;;  %vm399_vm1 = vcmask 261120  }
  0x77   : > { %2019 = vsyncadd (%p2473_p6), [#allocation9], 4294966784  ;;  %1684 = vmatprep.subr.mxu0 %v2046_v0  ;;  %1692 = vmatprep.mubr.msk.f32.mxu0 %vm2047_vm0, %v2046_v0  ;;  %v388_v4 = vld [vmem:[#allocation7] sm:$0xff]  ;;  %s2048_s10 = smov 104   ;;  %s2049_s19 = smov 120   ;;  %vm490_vm2 = vcmask 64512  }
  0x78   : > { %1695 = vmatprep.subr.mxu1 %v2046_v0  ;;  %1697 = vmatprep.mubr.msk.f32.mxu1 %vm2047_vm0, %v2046_v0  ;;  %v2292_v5 = vld [vmem:[%s332_s14] sm:$0xff]  ;;  %s2050_s17 = smov 96   ;;  %s2051_s20 = smov 112   ;;  %v480_v17 = vld [vmem:[%s341_s26] sm:$0xff] }
  0x79   : > { %1685 = vmatpush3.msra.mxu0 %v391_v1  ;;  %v1630_v6 = vld [vmem:[%s2441_s3] ss:$0 sm:$0xff]  ;;  %vm798_vm3 = vcmp.eq.f32.partialorder %v480_v17, 0.0  ;;  %s2052_s15 = smov 64   ;;  %v484_v17 = vld [vmem:[#allocation8 + $0x18] sm:$0xff]  ;;  %s1652_s2 = sshll.u32 %s2120_s9, 7 }
  0x7a   : > { %1686 = vmatprep.subr.mxu0 %v2046_v0  ;;  %s386_s13 = scalar_lea.vmem [#allocation10], %s2262_s4  ;;  %p2474_p7 = scmp.ne.s32.totalorder %s2465_s16, 0 }
  0x7b   : > { %1687 = vmatpush3.msra.mxu0 %v390_v2  ;;  %s1503_s26 = sshll.u32 %s386_s13, 4  ;;  %s1504_s26 = int_to_ptr.vmem [resolvable:$true] %s1503_s26 }
  0x7c   : > { %1688 = vmatprep.subr.mxu0 %v2046_v0 }
  0x7d   : > { %1689 = vmatpush3.msra.mxu0 %v389_v3 }
  0x7e   : > { %1690 = vmatprep.subr.mxu0 %v2046_v0 }
  0x7f   : > { %1691 = vmatpush3.msra.mxu0 %v388_v4 }
  0x80   : > { %1693 = vmatmul.mubr.msk.f32.vlgmr.msra.gmra.mxu0 %vm399_vm1, %v2292_v5  ;;  %1705 = vmatprep.subr.mxu0 %v2046_v0 }
  0x81   : > { %1707 = vmatprep.mubr.msk.f32.mxu0 %vm2047_vm0, %v2046_v0 }
 0x140   : > { %v469_v7 = vpop.f32.mrf.mxu0 }
 0x141   : > { %v2303_v8 = vadd.f32 %v1630_v6, %v469_v7 }
 0x142   : > { %v1694_v9 = vpop.f32.mrf.mxu0 }
 0x143   : > { %478 = vrot.lane.b32.xlu1 %v2303_v8, %s2048_s10  ;;  %474 = vrot.lane.b32.xlu0 %v2303_v8, %s2049_s19  ;;  %s1501_s10 = scalar_lea.hbm %s2446_s8, %s1652_s2  ;;  %s1490_s19 = scalar_lea.sflag [#allocation4], %s2259_s22 }
 0x147   : > { %488 = vrot.lane.b32.xlu1 %v2303_v8, %s2050_s17  ;;  %476 = vrot.lane.b32.xlu0 %v2303_v8, %s2051_s20  ;;  %s2053_s20 = smov [#allocation10]  }
 0x1b5   : > { %v2309_v10 = vpop.permute.xlu1 %478  ;;  %v475_v11 = vpop.permute.xlu0 %474 }
 0x1b6   : > { %565 = vrot.lane.b32.xlu0 %v475_v11, %s2050_s17 }
 0x1b9   : > { %v489_v12 = vpop.permute.xlu1 %488  ;;  %v2311_v13 = vpop.permute.xlu0 %476 }
 0x1ba   : > { %1696 = vmatpush3.xpose.msk.msra.mxu1 %vm490_vm2, %v489_v12  ;;  %717 = vrot.lane.b32.xlu0 %v2309_v10, %s2050_s17  ;;  %v481_v12 = vld [vmem:[#allocation8] sm:$0xff] }
 0x1bb   : > { %641 = vrot.lane.b32.xlu1 %v2311_v13, %s2050_s17  ;;  %1700 = vmatprep.subr.mxu1 %v2046_v0  ;;  %s1962_s17 = scalar_lea.vmem %s1504_s26, 128 }
 0x1bc   : > { %p1963_p12 = scmp.ne.s32.totalorder %s1504_s26, %s1962_s17 }
 0x1bd   : > { %1698 = vmatmul.mubr.msk.f32.vlgmr.msra.gmra.mxu1 %vm490_vm2, %v2303_v8 }
 0x1be   : > { %1702 = vmatprep.mubr.msk.f32.mxu1 %vm2047_vm0, %v2046_v0  ;;  %p1964_p9 = pnand %p1963_p12, %p2474_p7 }
 0x1c0   : > { %p1965_p13 = pneg %p1964_p9 }
 0x228   : > { %v566_v14 = vpop.permute.xlu0 %565 }
 0x229   : > { %1701 = vmatpush3.xpose.msk.msra.mxu1 %vm490_vm2, %v566_v14  ;;  %v483_v14 = vld [vmem:[#allocation8 + $0x10] sm:$0xff] }
 0x22a   : > { %1710 = vmatprep.subr.mxu1 %v2046_v0 }
 0x22c   : > { %1703 = vmatmul.mubr.msk.f32.vlgmr.msra.gmra.mxu1 %vm490_vm2, %v475_v11  ;;  %v718_v15 = vpop.permute.xlu0 %717 }
 0x22d   : > { %v642_v16 = vpop.permute.xlu1 %641  ;;  %1711 = vmatpush3.xpose.msk.msra.mxu1 %vm490_vm2, %v718_v15  ;;  %1712 = vmatprep.mubr.msk.f32.mxu1 %vm2047_vm0, %v2046_v0 }
 0x22e   : > { %1706 = vmatpush3.xpose.msk.msra.mxu0 %vm490_vm2, %v642_v16  ;;  %1720 = vmatprep.subr.mxu1 %v2046_v0 }
 0x22f   : > { %1715 = vmatprep.subr.mxu0 %v2046_v0 }
 0x230   : > { %1713 = vmatmul.mubr.msk.f32.vlgmr.msra.gmra.mxu1 %vm490_vm2, %v2309_v10 }
 0x231   : > { %1708 = vmatmul.mubr.msk.f32.vlgmr.msra.gmra.mxu0 %vm490_vm2, %v2311_v13  ;;  %1722 = vmatprep.mubr.msk.f32.mxu1 %vm2047_vm0, %v2046_v0 }
 0x232   : > { %1717 = vmatprep.mubr.msk.f32.mxu0 %vm2047_vm0, %v2046_v0 }
 0x27d   : > { %v561_v18 = vpop.f32.mrf.mxu1 }
 0x27e   : > { %v794_v19 = vmul.f32 0.35355338, %v561_v18 }
 0x27f   : > { %v1699_v20 = vpop.f32.mrf.mxu1 }
 0x280   : > { %v801_v21 = vsel %vm798_vm3, -1e+10, %v794_v19 }
 0x281   : > { %v805_v22 = vsel %vm490_vm2, %v801_v21, -inf }
 0x282   : > { %806 = vmax.xlane.f32.xlu1 %v805_v22 }
 0x2ec   : > { %v637_v23 = vpop.f32.mrf.mxu1 }
 0x2ed   : > { %v795_v24 = vmul.f32 0.35355338, %v637_v23 }
 0x2ee   : > { %v1704_v25 = vpop.f32.mrf.mxu1 }
 0x2ef   : > { %v802_v26 = vsel %vm798_vm3, -1e+10, %v795_v24 }
 0x2f0   : > { %v789_v27 = vpop.f32.mrf.mxu1  ;;  %v808_v28 = vsel %vm490_vm2, %v802_v26, -inf }
 0x2f1   : > { %v713_v29 = vpop.f32.mrf.mxu0  ;;  %v797_v30 = vmul.f32 0.35355338, %v789_v27  ;;  %809 = vmax.xlane.f32.xlu0 %v808_v28 }
 0x2f2   : > { %v796_v31 = vmul.f32 0.35355338, %v713_v29  ;;  %v1714_v32 = vpop.f32.mrf.mxu1 }
 0x2f3   : > { %v1709_v33 = vpop.f32.mrf.mxu0  ;;  %v804_v34 = vsel %vm798_vm3, -1e+10, %v797_v30 }
 0x2f4   : > { %v814_v35 = vsel %vm490_vm2, %v804_v34, -inf  ;;  %v803_v36 = vsel %vm798_vm3, -1e+10, %v796_v31 }
 0x2f5   : > { %815 = vmax.xlane.f32.xlu1 %v814_v35  ;;  %v811_v37 = vsel %vm490_vm2, %v803_v36, -inf }
 0x2f6   : > { %812 = vmax.xlane.f32.xlu0 %v811_v37 }
 0x306   : > { %925 = vrot.lane.b32.xlu1 %v475_v11, %s2052_s15 }
 0x30b   : > { %v807_v38 = vpop.xlane.xlu1 %806 }
 0x30c   : > { %849 = vrot.lane.b32.xlu0 %v2303_v8, %s2052_s15  ;;  %v817_v39 = vsub.f32 %v801_v21, %v807_v38 }
 0x30e   : > { %v821_v40 = vmul.f32 1.442695, %v817_v39 }
 0x310   : > { %1836 = vpow2.f32 %v821_v40 }
 0x31d   : > { %v1837_v41 = vpop.eup %1836 }
 0x31e   : > { %v829_v42 = vsel %vm490_vm2, %v1837_v41, 0.0 }
 0x32b   : > { %830 = vadd.xlane.f32.xlu0 %v829_v42 }
 0x37a   : > { %v810_v43 = vpop.xlane.xlu0 %809 }
 0x37b   : > { %v818_v44 = vsub.f32 %v802_v26, %v810_v43 }
 0x37d   : > { %v823_v45 = vmul.f32 1.442695, %v818_v44 }
 0x37e   : > { %v816_v46 = vpop.xlane.xlu1 %815 }
 0x37f   : > { %1838 = vpow2.f32 %v823_v45  ;;  %v820_v47 = vsub.f32 %v804_v34, %v816_v46  ;;  %v813_v48 = vpop.xlane.xlu0 %812 }
 0x380   : > { %v819_v49 = vsub.f32 %v803_v36, %v813_v48  ;;  %v1648_v36 = vld [vmem:[%s2443_s5] ss:$0 sm:$0xff] }
 0x381   : > { %v827_v50 = vmul.f32 1.442695, %v820_v47 }
 0x382   : > { %v825_v51 = vmul.f32 1.442695, %v819_v49  ;;  %v926_v52 = vpop.permute.xlu1 %925 }
 0x383   : > { %1840 = vpow2.f32 %v827_v50  ;;  %v850_v53 = vpop.permute.xlu0 %849  ;;  %1721 = vmatpush3.msra.mxu1 %v926_v52  ;;  %v1650_v52 = vld [vmem:[%s2445_s7] ss:$0 sm:$0xff] }
 0x384   : > { %1842 = vpow2.f32 %v825_v51  ;;  %1716 = vmatpush3.msra.mxu0 %v850_v53  ;;  %1730 = vmatprep.subr.mxu1 %v2046_v0 }
 0x385   : > { %1725 = vmatprep.subr.mxu0 %v2046_v0 }
 0x38c   : > { %v1839_v54 = vpop.eup %1838 }
 0x38d   : > { %v832_v55 = vsel %vm490_vm2, %v1839_v54, 0.0 }
 0x38e   : > { %833 = vadd.xlane.f32.xlu1 %v832_v55 }
 0x390   : > { %v1841_v56 = vpop.eup %1840 }
 0x391   : > { %v1843_v57 = vpop.eup %1842  ;;  %v838_v58 = vsel %vm490_vm2, %v1841_v56, 0.0 }
 0x392   : > { %839 = vadd.xlane.f32.xlu1 %v838_v58  ;;  %v835_v59 = vsel %vm490_vm2, %v1843_v57, 0.0 }
 0x393   : > { %836 = vadd.xlane.f32.xlu0 %v835_v59 }
 0x3a3   : > { %1001 = vrot.lane.b32.xlu1 %v2311_v13, %s2052_s15  ;;  %v482_v13 = vld [vmem:[#allocation8 + $0x8] sm:$0xff] }
 0x3a9   : > { %1077 = vrot.lane.b32.xlu0 %v2309_v10, %s2052_s15  ;;  %s1966_s15 = sshll.u32 %s2053_s20, 4  ;;  %s1967_s15 = int_to_ptr.vmem [resolvable:$false] %s1966_s15 }
 0x3aa   : > { %s1968_s9 = scalar_lea.vmem %s1967_s15, 256  ;;  %p1969_p5 = scmp.lt.s32.totalorder %s1504_s26, %s1967_s15 }
 0x3ab   : > { %p1970_p1 = scmp.lt.s32.totalorder %s1968_s9, %s1962_s17 }
 0x3ad   : > { %p1971_p3 = por %p1970_p1, %p1969_p5 }
 0x3af   : > { %p1972_p4 = pnand %p1971_p3, %p1965_p13 }
 0x3b4   : > { %v831_v60 = vpop.xlane.xlu0 %830 }
 0x3b5   : > { %1844 = vrcp.f32 %v831_v60 }
 0x3c2   : > { %v1845_v61 = vpop.eup %1844 }
 0x3c3   : > { %v842_v62 = vmul.f32 %v1845_v61, %v1837_v41 }
 0x3c5   : > { %1718 = vmatmul.mubr.msk.f32.vlgmr.msra.gmra.mxu0 %vm490_vm2, %v842_v62 }
 0x3c6   : > { %1727 = vmatprep.mubr.msk.f32.mxu0 %vm2047_vm0, %v2046_v0 }
 0x417   : > { %v834_v63 = vpop.xlane.xlu1 %833 }
 0x418   : > { %1846 = vrcp.f32 %v834_v63 }
 0x41b   : > { %v840_v1 = vpop.xlane.xlu1 %839 }
 0x41c   : > { %1848 = vrcp.f32 %v840_v1  ;;  %v837_v2 = vpop.xlane.xlu0 %836 }
 0x41d   : > { %1850 = vrcp.f32 %v837_v2 }
 0x41f   : > { %v1002_v3 = vpop.permute.xlu1 %1001 }
 0x420   : > { %1726 = vmatpush3.msra.mxu0 %v1002_v3  ;;  %v1078_v7 = vpop.permute.xlu0 %1077 }
 0x421   : > { %1735 = vmatprep.subr.mxu0 %v2046_v0 }
 0x425   : > { %v1847_v4 = vpop.eup %1846 }
 0x426   : > { %v844_v6 = vmul.f32 %v1847_v4, %v1839_v54 }
 0x428   : > { %1723 = vmatmul.mubr.msk.f32.vlgmr.msra.gmra.mxu1 %vm490_vm2, %v844_v6 }
 0x429   : > { %v1849_v8 = vpop.eup %1848  ;;  %1731 = vmatpush3.msra.mxu1 %v1078_v7  ;;  %1732 = vmatprep.mubr.msk.f32.mxu1 %vm2047_vm0, %v2046_v0 }
 0x42a   : > { %v1851_v9 = vpop.eup %1850  ;;  %v848_v10 = vmul.f32 %v1849_v8, %v1841_v56  ;;  %1740 = vmatprep.subr.mxu1 %v2046_v0 }
 0x42b   : > { %v846_v11 = vmul.f32 %v1851_v9, %v1843_v57 }
 0x42c   : > { %1733 = vmatmul.mubr.msk.f32.vlgmr.msra.gmra.mxu1 %vm490_vm2, %v848_v10 }
 0x42d   : > { %1728 = vmatmul.mubr.msk.f32.vlgmr.msra.gmra.mxu0 %vm490_vm2, %v846_v11  ;;  %1742 = vmatprep.mubr.msk.f32.mxu1 %vm2047_vm0, %v2046_v0 }
 0x42e   : > { %1736 = vmatpush3.msra.mxu0 %v481_v12  ;;  %1737 = vmatprep.mubr.msk.f32.mxu0 %vm2047_vm0, %v2046_v0 }
 0x42f   : > { %1745 = vmatprep.subr.mxu0 %v2046_v0  ;;  %1741 = vmatpush3.msra.mxu1 %v482_v13 }
 0x430   : > { %1750 = vmatprep.subr.mxu1 %v2046_v0 }
 0x485   : > { %v921_v15 = vpop.f32.mrf.mxu0 }
 0x486   : > { %1738 = vmatmul.mubr.msk.f32.vlgmr.msra.gmra.mxu0 %vm490_vm2, %v921_v15 }
 0x487   : > { %v1719_v16 = vpop.f32.mrf.mxu0  ;;  %1746 = vmatpush3.msra.mxu0 %v483_v14  ;;  %1747 = vmatprep.mubr.msk.f32.mxu0 %vm2047_vm0, %v2046_v0 }
 0x4e8   : > { %v997_v18 = vpop.f32.mrf.mxu1 }
 0x4e9   : > { %1743 = vmatmul.mubr.msk.f32.vlgmr.msra.gmra.mxu1 %vm490_vm2, %v997_v18 }
 0x4ea   : > { %v1724_v19 = vpop.f32.mrf.mxu1  ;;  %1751 = vmatpush3.msra.mxu1 %v484_v17  ;;  %1752 = vmatprep.mubr.msk.f32.mxu1 %vm2047_vm0, %v2046_v0 }
 0x4ec   : > { %v1149_v20 = vpop.f32.mrf.mxu1 }
 0x4ed   : > { %v1073_v21 = vpop.f32.mrf.mxu0  ;;  %1753 = vmatmul.mubr.msk.f32.vlgmr.msra.gmra.mxu1 %vm490_vm2, %v1149_v20 }
 0x4ee   : > { %1748 = vmatmul.mubr.msk.f32.vlgmr.msra.gmra.mxu0 %vm490_vm2, %v1073_v21  ;;  %v1734_v22 = vpop.f32.mrf.mxu1 }
 0x4ef   : > { %v1729_v23 = vpop.f32.mrf.mxu0 }
 0x546   : > { %v1222_v24 = vpop.f32.mrf.mxu0 }
 0x547   : > { %v1445_v29 = vsel %vm399_vm1, %v1222_v24, 0.0 }
 0x548   : > { %v1739_v25 = vpop.f32.mrf.mxu0 }
 0x5a9   : > { %v1295_v26 = vpop.f32.mrf.mxu1 }
 0x5aa   : > { %v1446_v27 = vsel %vm399_vm1, %v1295_v26, 0.0 }
 0x5ab   : > { %v1744_v28 = vpop.f32.mrf.mxu1  ;;  %v1447_v31 = vadd.f32 %v1446_v27, %v1445_v29 }
 0x5ad   : > { %v1441_v30 = vpop.f32.mrf.mxu1 }
 0x5ae   : > { %v1368_v32 = vpop.f32.mrf.mxu0  ;;  %v1450_v37 = vsel %vm399_vm1, %v1441_v30, 0.0 }
 0x5af   : > { %v1448_v0 = vsel %vm399_vm1, %v1368_v32, 0.0  ;;  %v1754_v33 = vpop.f32.mrf.mxu1 }
 0x5b0   : > { %v1449_v34 = vadd.f32 %v1448_v0, %v1447_v31  ;;  %v1749_v35 = vpop.f32.mrf.mxu0 }
 0x5b2   : > { %v1451_v38 = vadd.f32 %v1450_v37, %v1449_v34 }
 0x5b4   : > { %v1458_v39 = vadd.f32 %v1648_v36, %v1451_v38 }
 0x5b6   : > { %v1459_v40 = vadd.f32 %v1458_v39, %v2292_v5  ;;  %v1649_v5 = vld [vmem:[%s2444_s6] ss:$0 sm:$0xff] }
 0x5b8   : > { %v1460_v41 = vsel %vm399_vm1, %v1459_v40, 0.0 }
 0x5b9   : > { %1461 = vadd.xlane.f32.xlu1 %v1460_v41 }
 0x642   : > { %v1462_v42 = vpop.xlane.xlu1 %1461 }
 0x643   : > { %v1464_v43 = vmul.f32 0.03125, %v1462_v42 }
 0x645   : > { %v1465_v44 = vsub.f32 %v1459_v40, %v1464_v43 }
 0x647   : > { %v1466_v45 = vmul.f32 %v1465_v44, %v1465_v44 }
 0x649   : > { %v1467_v46 = vsel %vm399_vm1, %v1466_v45, 0.0 }
 0x64a   : > { %1468 = vadd.xlane.f32.xlu0 %v1467_v46 }
 0x6d3   : > { %v1469_v47 = vpop.xlane.xlu0 %1468 }
 0x6d4   : > { %v1470_v48 = vmul.f32 0.03125, %v1469_v47 }
 0x6d6   : > { %v1471_v49 = vadd.f32 1e-05, %v1470_v48 }
 0x6d8   : > { %1852 = vrsqrt.f32 %v1471_v49 }
 0x6e5   : > { %v1853_v50 = vpop.eup %1852 }
 0x6e6   : > { %v1473_v51 = vmul.f32 %v1853_v50, %v1465_v44 }
 0x6e8   : > { %v1480_v53 = vmul.f32 %v1649_v5, %v1473_v51 }
 0x6ea   : > { %v1487_v54 = vadd.f32 %v1650_v52, %v1480_v53 }
 0x6ec   : > { %1488 = vst.msk [vmem:[%s386_s13] sm:$0xff] %vm399_vm1, %v1487_v54 }
 0x6ed   : > { %1975 = shalt.err (!%p1972_p4)
}
 0x6ee   : > { %s1976_s4 = scalar_lea.hbm %s1501_s10, 128  ;;  %s1980_s23 = scalar_lea.hbm %s2446_s8, 256 }
 0x6ef   : > { %p1977_p10 = scmp.ne.s32.totalorder %s1501_s10, %s1976_s4  ;;  %p1981_p11 = scmp.lt.s32.totalorder %s1501_s10, %s2446_s8 }
 0x6f0   : > { %p1982_p2 = scmp.lt.s32.totalorder %s1980_s23, %s1976_s4 }
 0x6f1   : > { %p1978_p0 = pnand %p1977_p10, %p2474_p7 }
 0x6f2   : > { %p1983_p6 = por %p1982_p2, %p1981_p11 }
 0x6f3   : > { %p1979_p8 = pneg %p1978_p0 }
 0x6f5   : > { %p1984_p12 = pnand %p1983_p6, %p1979_p8 }
 0x6f7   : > { %1987 = shalt.err (!%p1984_p12)
}
 0x6f8   : > { %1767 = dma.vmem_to_hbm [thread:$0]  (%p2474_p7), %s1504_s26, 128, %s1501_s10, %s1490_s19  }
 0x6f9 PF: > { %s1515_s24 = sand.u32 1, %s2026_s27   ;;  %p2475_p9 = scmp.ne.s32.totalorder %s2458_s12, 0 }
 0x6fa   : > { %p2476_p13 = scmp.ge.s32.totalorder %s2038_s30, 2  ;;  %s1516_s14 = scalar_lea.sflag [#allocation4], %s1515_s24 }
 0x6fc   : > { %p1784_p5 = pnand %p2476_p13, %p2475_p9 }
 0x6fe   : > { %p1785_p1 = pneg %p1784_p5 }
 0x700   : > { %2021 = dma.done.wait (%p1785_p1), %s1516_s14, 128  }
 0x701   : > { %2023 = vsyncadd (%p1785_p1), %s1516_s14, 4294967168  ;;  %s2477_s30 = sld [smem:[#allocation17_spill]]  ;;  %s2480_s27 = smov %s2030_s28 }
 0x702   : > { %s2478_s2 = sld [smem:[#allocation16_spill]] }
 0x703   : > { %s2479_s29 = sld [smem:[#allocation18_spill]] }
 0x707   : > { %p25_p3 = scmp.ge.s32.totalorder %s2477_s30, 4  }
 0x708   : > { %s2481_s28 = smov %s2478_s2 }
 0x709   :  { %27 = sbr.rel (!%p25_p3) target bundleno = 11 (0xb), region = 118 }
 0x70e   :  { %1521 = vsyncpa [#allocation3], 1 }
 0x70f   :  { %1523 = vsyncpa [#allocation3 + $0x1], 1 }
 0x710   :  { %1524 = vsyncpa [#allocation6], 1 }
 0x711   :  { %1526 = vsyncpa [#allocation6 + $0x1], 1 }
 0x712   :  { %1527 = vsyncpa [#allocation9], 1 }
 0x713   :  { %1528 = vsyncpa [#allocation4], 1 }
 0x714   :  { %1530 = vsyncpa [#allocation4 + $0x1], 1 }

</bundles_post_ra>
